<compile_context>
chip_gen: v5e
topology: v5e:2x2
jax: 0.10.0
libtpu: 0.0.40
codegen_flags: <defaults>
</compile_context>

<pallas_src>
import math

import jax
import jax.numpy as jnp
from jax.experimental import pallas as pl
from jax.experimental.pallas import tpu as pltpu

# ---- small RoBERTa-style config (synthetic, deterministic init) ----
VOCAB = 100
PAD_ID = 1            # roberta padding_idx
BATCH = 2
SEQ = 8
HIDDEN = 32
N_HEADS = 4
HEAD_DIM = HIDDEN // N_HEADS
INTER = 64
N_LAYERS = 2
LN_EPS = 1e-5


# ----------------------------- kernel helpers -------------------------------

def _layernorm(h, g, b):
    mu = jnp.mean(h, axis=-1, keepdims=True)
    var = jnp.mean(jnp.square(h - mu), axis=-1, keepdims=True)
    return (h - mu) * jax.lax.rsqrt(var + LN_EPS) * g + b


def _gelu(y):
    # TODO(synk): HF RoBERTa uses exact erf-GELU; tanh approximation kept for
    # robust Mosaic lowering of the transcendental.
    return 0.5 * y * (1.0 + jnp.tanh(
        0.7978845608028654 * (y + 0.044715 * y * y * y)))


# ------------------------------ fused kernel --------------------------------

def encoder_kernel(emb_ref, emb_g_ref, emb_b_ref, bias_ref,
                   wqkv_ref, bqkv_ref, wo_ref, bo_ref,
                   ln1_g_ref, ln1_b_ref, w1_ref, b1_ref,
                   w2_ref, b2_ref, ln2_g_ref, ln2_b_ref,
                   head_w_ref, head_b_ref,
                   logits_ref,
                   h_sc, ctx_sc, cls_prev_sc):
    """Grid = (batch, layer).  One full encoder layer per grid step; the
    hidden state is a VMEM scratch resident across the 'arbitrary' layer axis.
    The classification head is fused into the epilogue of the last layer."""
    l = pl.program_id(1)
    n_layers = pl.num_programs(1)

    # ---- step 0: embedding LayerNorm into the resident hidden state ----
    @pl.when(l == 0)
    def _():
        h0 = _layernorm(emb_ref[...], emb_g_ref[...], emb_b_ref[...])
        h_sc[...] = h0
        cls_prev_sc[...] = h0[0:1, :]     # correct hidden_states[-2] if L == 1

    x = h_sc[...]                                           # (S, H)
    bias = bias_ref[0]                                      # (1, S) key-axis bias

    # ---- fused QKV projection: single (S, H) @ (H, 3H) matmul ----
    qkv = jnp.dot(x, wqkv_ref[0],
                  preferred_element_type=jnp.float32) + bqkv_ref[0]   # (S, 3H)

    # ---- per-head attention, everything resident in VMEM ----
    scale = 1.0 / math.sqrt(HEAD_DIM)
    for hh in range(N_HEADS):
        q = qkv[:, hh * HEAD_DIM:(hh + 1) * HEAD_DIM]
        k = qkv[:, HIDDEN + hh * HEAD_DIM: HIDDEN + (hh + 1) * HEAD_DIM]
        v = qkv[:, 2 * HIDDEN + hh * HEAD_DIM: 2 * HIDDEN + (hh + 1) * HEAD_DIM]
        # q @ k^T without an explicit transpose (contract on last dims)
        s = jax.lax.dot_general(q, k, (((1,), (1,)), ((), ())),
                                preferred_element_type=jnp.float32)
        s = s * scale + bias                                # (S, S)
        m = jnp.max(s, axis=-1, keepdims=True)
        p = jnp.exp(s - m)
        inv = pl.reciprocal(jnp.sum(p, axis=-1, keepdims=True), approx=True)
        p = p * inv
        ctx_sc[:, hh * HEAD_DIM:(hh + 1) * HEAD_DIM] = jnp.dot(
            p, v, preferred_element_type=jnp.float32)

    # ---- output projection + residual + LayerNorm ----
    attn = jnp.dot(ctx_sc[...], wo_ref[0],
                   preferred_element_type=jnp.float32) + bo_ref[0]
    h1 = _layernorm(attn + x, ln1_g_ref[0], ln1_b_ref[0])

    # ---- FFN (intermediate never leaves VMEM) + residual + LayerNorm ----
    y = jnp.dot(h1, w1_ref[0], preferred_element_type=jnp.float32) + b1_ref[0]
    ff = jnp.dot(_gelu(y), w2_ref[0],
                 preferred_element_type=jnp.float32) + b2_ref[0]
    h2 = _layernorm(ff + h1, ln2_g_ref[0], ln2_b_ref[0])
    h_sc[...] = h2

    # ---- stash CLS row of the second-to-last hidden state ----
    @pl.when(l == n_layers - 2)
    def _():
        cls_prev_sc[...] = h2[0:1, :]

    # ---- epilogue: cat(CLS[-1], CLS[-2]) @ head_w + head_b ----
    @pl.when(l == n_layers - 1)
    def _():
        w = head_w_ref[...]                                 # (2H, 1)
        logit = (jnp.dot(h2[0:1, :], w[0:HIDDEN, :],
                         preferred_element_type=jnp.float32)
                 + jnp.dot(cls_prev_sc[...], w[HIDDEN:2 * HIDDEN, :],
                           preferred_element_type=jnp.float32)
                 + head_b_ref[...])                         # (1, 1)
        logits_ref[0] = logit


# ------------------------------ parameters ----------------------------------

def init_params(key):
    ks = jax.random.split(key, 8)

    def nrm(k, shape, std=0.02):
        return (std * jax.random.normal(k, shape)).astype(jnp.float32)

    zeros = lambda shape: jnp.zeros(shape, jnp.float32)
    ones = lambda shape: jnp.ones(shape, jnp.float32)

    return {
        'word_emb': nrm(ks[0], (VOCAB, HIDDEN)),
        'pos_emb': nrm(ks[1], (SEQ + PAD_ID + 1, HIDDEN)),   # roberta offset
        'type_emb': nrm(ks[2], (1, HIDDEN)),
        'emb_ln_g': ones((1, HIDDEN)),
        'emb_ln_b': zeros((1, HIDDEN)),
        # per-layer weights stacked on a leading layer axis; q|k|v fused
        'wqkv': nrm(ks[3], (N_LAYERS, HIDDEN, 3 * HIDDEN)),
        'bqkv': zeros((N_LAYERS, 1, 3 * HIDDEN)),
        'wo': nrm(ks[4], (N_LAYERS, HIDDEN, HIDDEN)),
        'bo': zeros((N_LAYERS, 1, HIDDEN)),
        'ln1_g': ones((N_LAYERS, 1, HIDDEN)),
        'ln1_b': zeros((N_LAYERS, 1, HIDDEN)),
        'w1': nrm(ks[5], (N_LAYERS, HIDDEN, INTER)),
        'b1': zeros((N_LAYERS, 1, INTER)),
        'w2': nrm(ks[6], (N_LAYERS, INTER, HIDDEN)),
        'b2': zeros((N_LAYERS, 1, HIDDEN)),
        'ln2_g': ones((N_LAYERS, 1, HIDDEN)),
        'ln2_b': zeros((N_LAYERS, 1, HIDDEN)),
        'head_w': nrm(ks[7], (2 * HIDDEN, 1)),               # l0: std=0.02
        'head_b': zeros((1, 1)),
    }


# ------------------------------- forward -------------------------------------

def roberta_forward(params, ids, attention_mask):
    B, S = ids.shape
    # RoBERTa position ids + embedding lookups: plain-JAX glue (gathers).
    nonpad = (ids != PAD_ID).astype(jnp.int32)
    pos_ids = jnp.cumsum(nonpad, axis=1) * nonpad + PAD_ID
    emb = (params['word_emb'][ids]
           + params['pos_emb'][pos_ids]
           + params['type_emb'][0]).reshape(B * S, HIDDEN)

    # additive attention-mask bias along the key axis
    bias = ((1.0 - attention_mask.astype(jnp.float32)) * -10000.0
            ).reshape(B, 1, S)

    per_layer = lambda b, l: (l, 0, 0)   # pick this layer's weight slice
    shared2d = lambda b, l: (0, 0)       # broadcast small 2-D params

    logits = pl.pallas_call(
        encoder_kernel,
        out_shape=jax.ShapeDtypeStruct((B, 1, 1), jnp.float32),
        grid=(B, N_LAYERS),
        in_specs=[
            pl.BlockSpec((S, HIDDEN), lambda b, l: (b, 0)),          # emb
            pl.BlockSpec((1, HIDDEN), shared2d),                     # emb ln g
            pl.BlockSpec((1, HIDDEN), shared2d),                     # emb ln b
            pl.BlockSpec((1, 1, S), lambda b, l: (b, 0, 0)),         # mask bias
            pl.BlockSpec((1, HIDDEN, 3 * HIDDEN), per_layer),        # wqkv
            pl.BlockSpec((1, 1, 3 * HIDDEN), per_layer),             # bqkv
            pl.BlockSpec((1, HIDDEN, HIDDEN), per_layer),            # wo
            pl.BlockSpec((1, 1, HIDDEN), per_layer),                 # bo
            pl.BlockSpec((1, 1, HIDDEN), per_layer),                 # ln1 g
            pl.BlockSpec((1, 1, HIDDEN), per_layer),                 # ln1 b
            pl.BlockSpec((1, HIDDEN, INTER), per_layer),             # w1
            pl.BlockSpec((1, 1, INTER), per_layer),                  # b1
            pl.BlockSpec((1, INTER, HIDDEN), per_layer),             # w2
            pl.BlockSpec((1, 1, HIDDEN), per_layer),                 # b2
            pl.BlockSpec((1, 1, HIDDEN), per_layer),                 # ln2 g
            pl.BlockSpec((1, 1, HIDDEN), per_layer),                 # ln2 b
            pl.BlockSpec((2 * HIDDEN, 1), shared2d),                 # head w
            pl.BlockSpec((1, 1), shared2d),                          # head b
        ],
        out_specs=pl.BlockSpec((1, 1, 1), lambda b, l: (b, 0, 0)),   # logits
        scratch_shapes=[pltpu.VMEM((S, HIDDEN), jnp.float32),        # hidden
                        pltpu.VMEM((S, HIDDEN), jnp.float32),        # attn ctx
                        pltpu.VMEM((1, HIDDEN), jnp.float32)],       # CLS[-2]
        compiler_params=pltpu.CompilerParams(
            dimension_semantics=("parallel", "arbitrary")),
    )(emb, params['emb_ln_g'], params['emb_ln_b'], bias,
      params['wqkv'], params['bqkv'], params['wo'], params['bo'],
      params['ln1_g'], params['ln1_b'], params['w1'], params['b1'],
      params['w2'], params['b2'], params['ln2_g'], params['ln2_b'],
      params['head_w'], params['head_b'])

    return logits.reshape(B, 1)


# --------------------------------- main --------------------------------------

if __name__ == "__main__":
    key = jax.random.PRNGKey(0)
    pkey, ikey = jax.random.split(key)
    params = init_params(pkey)

    ids = jax.random.randint(ikey, (BATCH, SEQ), 3, VOCAB, dtype=jnp.int32)
    attention_mask = jnp.ones((BATCH, SEQ), dtype=jnp.float32)

    logits = jax.jit(roberta_forward)(params, ids, attention_mask)
    jax.block_until_ready(logits)
    assert logits.shape == (BATCH, 1) and logits.dtype == jnp.float32
    print("KERNEL_OK")
</pallas_src>

<mosaic_0001>
module attributes {stable_mosaic.version = 11 : i64} {
  func.func @encoder_kernel(%arg0: i32, %arg1: i32, %arg2: memref<8x32xf32, #tpu.memory_space<vmem>>, %arg3: memref<1x32xf32, #tpu.memory_space<vmem>>, %arg4: memref<1x32xf32, #tpu.memory_space<vmem>>, %arg5: memref<1x1x8xf32, #tpu.memory_space<vmem>>, %arg6: memref<1x32x96xf32, #tpu.memory_space<vmem>>, %arg7: memref<1x1x96xf32, #tpu.memory_space<vmem>>, %arg8: memref<1x32x32xf32, #tpu.memory_space<vmem>>, %arg9: memref<1x1x32xf32, #tpu.memory_space<vmem>>, %arg10: memref<1x1x32xf32, #tpu.memory_space<vmem>>, %arg11: memref<1x1x32xf32, #tpu.memory_space<vmem>>, %arg12: memref<1x32x64xf32, #tpu.memory_space<vmem>>, %arg13: memref<1x1x64xf32, #tpu.memory_space<vmem>>, %arg14: memref<1x64x32xf32, #tpu.memory_space<vmem>>, %arg15: memref<1x1x32xf32, #tpu.memory_space<vmem>>, %arg16: memref<1x1x32xf32, #tpu.memory_space<vmem>>, %arg17: memref<1x1x32xf32, #tpu.memory_space<vmem>>, %arg18: memref<64x1xf32, #tpu.memory_space<vmem>>, %arg19: memref<1x1xf32, #tpu.memory_space<vmem>>, %arg20: memref<1x1x1xf32, #tpu.memory_space<vmem>>, %arg21: memref<8x32xf32, #tpu.memory_space<vmem>>, %arg22: memref<8x32xf32, #tpu.memory_space<vmem>>, %arg23: memref<1x32xf32, #tpu.memory_space<vmem>>) attributes {dimension_semantics = [#tpu.dimension_semantics<parallel>, #tpu.dimension_semantics<arbitrary>], iteration_bounds = array<i64: 2, 2>, scalar_prefetch = 0 : i64, scratch_operands = 3 : i64, tpu.core_type = #tpu.core_type<tc>, window_params = [{transform_indices = @transform_0, window_bounds = array<i64: 8, 32>}, {pipeline_mode = #tpu.pipeline_mode<synchronous>, transform_indices = @transform_1, window_bounds = array<i64: 1, 32>}, {pipeline_mode = #tpu.pipeline_mode<synchronous>, transform_indices = @transform_2, window_bounds = array<i64: 1, 32>}, {transform_indices = @transform_3, window_bounds = array<i64: 1, 1, 8>}, {transform_indices = @transform_4, window_bounds = array<i64: 1, 32, 96>}, {transform_indices = @transform_5, window_bounds = array<i64: 1, 1, 96>}, {transform_indices = @transform_6, window_bounds = array<i64: 1, 32, 32>}, {transform_indices = @transform_7, window_bounds = array<i64: 1, 1, 32>}, {transform_indices = @transform_8, window_bounds = array<i64: 1, 1, 32>}, {transform_indices = @transform_9, window_bounds = array<i64: 1, 1, 32>}, {transform_indices = @transform_10, window_bounds = array<i64: 1, 32, 64>}, {transform_indices = @transform_11, window_bounds = array<i64: 1, 1, 64>}, {transform_indices = @transform_12, window_bounds = array<i64: 1, 64, 32>}, {transform_indices = @transform_13, window_bounds = array<i64: 1, 1, 32>}, {transform_indices = @transform_14, window_bounds = array<i64: 1, 1, 32>}, {transform_indices = @transform_15, window_bounds = array<i64: 1, 1, 32>}, {pipeline_mode = #tpu.pipeline_mode<synchronous>, transform_indices = @transform_16, window_bounds = array<i64: 64, 1>}, {pipeline_mode = #tpu.pipeline_mode<synchronous>, transform_indices = @transform_17, window_bounds = array<i64: 1, 1>}, {transform_indices = @transform_18, window_bounds = array<i64: 1, 1, 1>}]} {
    %c0_i32 = arith.constant 0 : i32
    %0 = arith.cmpi eq, %arg1, %c0_i32 : i32
    %1 = arith.extui %0 : i1 to i32
    %c0_i32_0 = arith.constant 0 : i32
    %2 = arith.cmpi ne, %1, %c0_i32_0 : i32
    scf.if %2 {
      %c0_90 = arith.constant 0 : index
      %c0_91 = arith.constant 0 : index
      %189 = vector.load %arg2[%c0_90, %c0_91] : memref<8x32xf32, #tpu.memory_space<vmem>>, vector<8x32xf32>
      %c0_92 = arith.constant 0 : index
      %c0_93 = arith.constant 0 : index
      %190 = vector.load %arg3[%c0_92, %c0_93] : memref<1x32xf32, #tpu.memory_space<vmem>>, vector<1x32xf32>
      %c0_94 = arith.constant 0 : index
      %c0_95 = arith.constant 0 : index
      %191 = vector.load %arg4[%c0_94, %c0_95] : memref<1x32xf32, #tpu.memory_space<vmem>>, vector<1x32xf32>
      %cst_96 = arith.constant dense<0.000000e+00> : vector<8xf32>
      %192 = vector.multi_reduction <add>, %189, %cst_96 [1] : vector<8x32xf32> to vector<8xf32>
      %193 = vector.shape_cast %192 : vector<8xf32> to vector<8x1xf32>
      %cst_97 = arith.constant 3.200000e+01 : f32
      %194 = vector.broadcast %cst_97 : f32 to vector<8x1xf32>
      %195 = arith.divf %193, %194 : vector<8x1xf32>
      %196 = vector.broadcast %195 : vector<8x1xf32> to vector<8x32xf32>
      %197 = arith.subf %189, %196 : vector<8x32xf32>
      %198 = arith.mulf %197, %197 : vector<8x32xf32>
      %cst_98 = arith.constant dense<0.000000e+00> : vector<8xf32>
      %199 = vector.multi_reduction <add>, %198, %cst_98 [1] : vector<8x32xf32> to vector<8xf32>
      %200 = vector.shape_cast %199 : vector<8xf32> to vector<8x1xf32>
      %cst_99 = arith.constant 3.200000e+01 : f32
      %201 = vector.broadcast %cst_99 : f32 to vector<8x1xf32>
      %202 = arith.divf %200, %201 : vector<8x1xf32>
      %203 = vector.broadcast %195 : vector<8x1xf32> to vector<8x32xf32>
      %204 = arith.subf %189, %203 : vector<8x32xf32>
      %cst_100 = arith.constant 9.99999974E-6 : f32
      %205 = vector.broadcast %cst_100 : f32 to vector<8x1xf32>
      %206 = arith.addf %202, %205 : vector<8x1xf32>
      %207 = math.rsqrt %206 : vector<8x1xf32>
      %208 = vector.broadcast %207 : vector<8x1xf32> to vector<8x32xf32>
      %209 = arith.mulf %204, %208 : vector<8x32xf32>
      %210 = vector.broadcast %190 : vector<1x32xf32> to vector<8x32xf32>
      %211 = arith.mulf %209, %210 : vector<8x32xf32>
      %212 = vector.broadcast %191 : vector<1x32xf32> to vector<8x32xf32>
      %213 = arith.addf %211, %212 : vector<8x32xf32>
      %c0_101 = arith.constant 0 : index
      %c0_102 = arith.constant 0 : index
      %214 = vector.load %arg21[%c0_101, %c0_102] : memref<8x32xf32, #tpu.memory_space<vmem>>, vector<8x32xf32>
      tpu.vector_store %arg21[%c0_101, %c0_102], %213 {strides = array<i32>} : memref<8x32xf32, #tpu.memory_space<vmem>>, vector<8x32xf32>,
      %215 = vector.extract_strided_slice %213 {offsets = [0, 0], sizes = [1, 32], strides = [1, 1]} : vector<8x32xf32> to vector<1x32xf32>
      %c0_103 = arith.constant 0 : index
      %c0_104 = arith.constant 0 : index
      %216 = vector.load %arg23[%c0_103, %c0_104] : memref<1x32xf32, #tpu.memory_space<vmem>>, vector<1x32xf32>
      tpu.vector_store %arg23[%c0_103, %c0_104], %215 {strides = array<i32>} : memref<1x32xf32, #tpu.memory_space<vmem>>, vector<1x32xf32>,
    } else {
    }
    %c0 = arith.constant 0 : index
    %c0_1 = arith.constant 0 : index
    %3 = vector.load %arg21[%c0, %c0_1] : memref<8x32xf32, #tpu.memory_space<vmem>>, vector<8x32xf32>
    %c0_2 = arith.constant 0 : index
    %c0_3 = arith.constant 0 : index
    %c0_4 = arith.constant 0 : index
    %4 = vector.load %arg5[%c0_2, %c0_3, %c0_4] : memref<1x1x8xf32, #tpu.memory_space<vmem>>, vector<1x1x8xf32>
    %5 = vector.shape_cast %4 : vector<1x1x8xf32> to vector<1x8xf32>
    %c0_5 = arith.constant 0 : index
    %c0_6 = arith.constant 0 : index
    %c0_7 = arith.constant 0 : index
    %6 = vector.load %arg6[%c0_5, %c0_6, %c0_7] : memref<1x32x96xf32, #tpu.memory_space<vmem>>, vector<1x32x96xf32>
    %7 = vector.shape_cast %6 : vector<1x32x96xf32> to vector<32x96xf32>
    %cst = arith.constant dense<0.000000e+00> : vector<8x96xf32>
    %8 = tpu.matmul %3, %7, %cst {dimension_numbers = #tpu.dot_dimension_numbers<[1], [0], [0], [1], [0, 0, 1, 1], [], []>} : vector<8x32xf32>, vector<32x96xf32>, vector<8x96xf32> -> vector<8x96xf32>
    %c0_8 = arith.constant 0 : index
    %c0_9 = arith.constant 0 : index
    %c0_10 = arith.constant 0 : index
    %9 = vector.load %arg7[%c0_8, %c0_9, %c0_10] : memref<1x1x96xf32, #tpu.memory_space<vmem>>, vector<1x1x96xf32>
    %10 = vector.shape_cast %9 : vector<1x1x96xf32> to vector<1x96xf32>
    %11 = vector.broadcast %10 : vector<1x96xf32> to vector<8x96xf32>
    %12 = arith.addf %8, %11 : vector<8x96xf32>
    %13 = vector.extract_strided_slice %12 {offsets = [0, 0], sizes = [8, 8], strides = [1, 1]} : vector<8x96xf32> to vector<8x8xf32>
    %14 = vector.extract_strided_slice %12 {offsets = [0, 32], sizes = [8, 8], strides = [1, 1]} : vector<8x96xf32> to vector<8x8xf32>
    %15 = vector.extract_strided_slice %12 {offsets = [0, 64], sizes = [8, 8], strides = [1, 1]} : vector<8x96xf32> to vector<8x8xf32>
    %cst_11 = arith.constant dense<0.000000e+00> : vector<8x8xf32>
    %16 = tpu.matmul %13, %14, %cst_11 {dimension_numbers = #tpu.dot_dimension_numbers<[1], [1], [0], [0], [0, 0, 1, 0], [], []>} : vector<8x8xf32>, vector<8x8xf32>, vector<8x8xf32> -> vector<8x8xf32>
    %cst_12 = arith.constant 0.353553385 : f32
    %17 = vector.broadcast %cst_12 : f32 to vector<8x8xf32>
    %18 = arith.mulf %16, %17 : vector<8x8xf32>
    %19 = vector.broadcast %5 : vector<1x8xf32> to vector<8x8xf32>
    %20 = arith.addf %18, %19 : vector<8x8xf32>
    %cst_13 = arith.constant dense<0xFF800000> : vector<8xf32>
    %21 = vector.multi_reduction <maximumf>, %20, %cst_13 [1] : vector<8x8xf32> to vector<8xf32>
    %22 = vector.shape_cast %21 : vector<8xf32> to vector<8x1xf32>
    %23 = vector.broadcast %22 : vector<8x1xf32> to vector<8x8xf32>
    %24 = arith.subf %20, %23 : vector<8x8xf32>
    %25 = math.exp %24 : vector<8x8xf32>
    %cst_14 = arith.constant dense<0.000000e+00> : vector<8xf32>
    %26 = vector.multi_reduction <add>, %25, %cst_14 [1] : vector<8x8xf32> to vector<8xf32>
    %27 = vector.shape_cast %26 : vector<8xf32> to vector<8x1xf32>
    %28 = tpu.reciprocal %27 {approx = true} : vector<8x1xf32> -> vector<8x1xf32>
    %29 = vector.broadcast %28 : vector<8x1xf32> to vector<8x8xf32>
    %30 = arith.mulf %25, %29 : vector<8x8xf32>
    %cst_15 = arith.constant dense<0.000000e+00> : vector<8x8xf32>
    %31 = tpu.matmul %30, %15, %cst_15 {dimension_numbers = #tpu.dot_dimension_numbers<[1], [0], [0], [1], [0, 0, 1, 1], [], []>} : vector<8x8xf32>, vector<8x8xf32>, vector<8x8xf32> -> vector<8x8xf32>
    %c0_16 = arith.constant 0 : index
    %c0_17 = arith.constant 0 : index
    %32 = vector.load %arg22[%c0_16, %c0_17] : memref<8x32xf32, #tpu.memory_space<vmem>>, vector<8x8xf32>
    tpu.vector_store %arg22[%c0_16, %c0_17], %31 {strides = array<i32>} : memref<8x32xf32, #tpu.memory_space<vmem>>, vector<8x8xf32>,
    %33 = vector.extract_strided_slice %12 {offsets = [0, 8], sizes = [8, 8], strides = [1, 1]} : vector<8x96xf32> to vector<8x8xf32>
    %34 = vector.extract_strided_slice %12 {offsets = [0, 40], sizes = [8, 8], strides = [1, 1]} : vector<8x96xf32> to vector<8x8xf32>
    %35 = vector.extract_strided_slice %12 {offsets = [0, 72], sizes = [8, 8], strides = [1, 1]} : vector<8x96xf32> to vector<8x8xf32>
    %cst_18 = arith.constant dense<0.000000e+00> : vector<8x8xf32>
    %36 = tpu.matmul %33, %34, %cst_18 {dimension_numbers = #tpu.dot_dimension_numbers<[1], [1], [0], [0], [0, 0, 1, 0], [], []>} : vector<8x8xf32>, vector<8x8xf32>, vector<8x8xf32> -> vector<8x8xf32>
    %cst_19 = arith.constant 0.353553385 : f32
    %37 = vector.broadcast %cst_19 : f32 to vector<8x8xf32>
    %38 = arith.mulf %36, %37 : vector<8x8xf32>
    %39 = vector.broadcast %5 : vector<1x8xf32> to vector<8x8xf32>
    %40 = arith.addf %38, %39 : vector<8x8xf32>
    %cst_20 = arith.constant dense<0xFF800000> : vector<8xf32>
    %41 = vector.multi_reduction <maximumf>, %40, %cst_20 [1] : vector<8x8xf32> to vector<8xf32>
    %42 = vector.shape_cast %41 : vector<8xf32> to vector<8x1xf32>
    %43 = vector.broadcast %42 : vector<8x1xf32> to vector<8x8xf32>
    %44 = arith.subf %40, %43 : vector<8x8xf32>
    %45 = math.exp %44 : vector<8x8xf32>
    %cst_21 = arith.constant dense<0.000000e+00> : vector<8xf32>
    %46 = vector.multi_reduction <add>, %45, %cst_21 [1] : vector<8x8xf32> to vector<8xf32>
    %47 = vector.shape_cast %46 : vector<8xf32> to vector<8x1xf32>
    %48 = tpu.reciprocal %47 {approx = true} : vector<8x1xf32> -> vector<8x1xf32>
    %49 = vector.broadcast %48 : vector<8x1xf32> to vector<8x8xf32>
    %50 = arith.mulf %45, %49 : vector<8x8xf32>
    %cst_22 = arith.constant dense<0.000000e+00> : vector<8x8xf32>
    %51 = tpu.matmul %50, %35, %cst_22 {dimension_numbers = #tpu.dot_dimension_numbers<[1], [0], [0], [1], [0, 0, 1, 1], [], []>} : vector<8x8xf32>, vector<8x8xf32>, vector<8x8xf32> -> vector<8x8xf32>
    %c0_23 = arith.constant 0 : index
    %c8 = arith.constant 8 : index
    %52 = vector.load %arg22[%c0_23, %c8] : memref<8x32xf32, #tpu.memory_space<vmem>>, vector<8x8xf32>
    tpu.vector_store %arg22[%c0_23, %c8], %51 {strides = array<i32>} : memref<8x32xf32, #tpu.memory_space<vmem>>, vector<8x8xf32>,
    %53 = vector.extract_strided_slice %12 {offsets = [0, 16], sizes = [8, 8], strides = [1, 1]} : vector<8x96xf32> to vector<8x8xf32>
    %54 = vector.extract_strided_slice %12 {offsets = [0, 48], sizes = [8, 8], strides = [1, 1]} : vector<8x96xf32> to vector<8x8xf32>
    %55 = vector.extract_strided_slice %12 {offsets = [0, 80], sizes = [8, 8], strides = [1, 1]} : vector<8x96xf32> to vector<8x8xf32>
    %cst_24 = arith.constant dense<0.000000e+00> : vector<8x8xf32>
    %56 = tpu.matmul %53, %54, %cst_24 {dimension_numbers = #tpu.dot_dimension_numbers<[1], [1], [0], [0], [0, 0, 1, 0], [], []>} : vector<8x8xf32>, vector<8x8xf32>, vector<8x8xf32> -> vector<8x8xf32>
    %cst_25 = arith.constant 0.353553385 : f32
    %57 = vector.broadcast %cst_25 : f32 to vector<8x8xf32>
    %58 = arith.mulf %56, %57 : vector<8x8xf32>
    %59 = vector.broadcast %5 : vector<1x8xf32> to vector<8x8xf32>
    %60 = arith.addf %58, %59 : vector<8x8xf32>
    %cst_26 = arith.constant dense<0xFF800000> : vector<8xf32>
    %61 = vector.multi_reduction <maximumf>, %60, %cst_26 [1] : vector<8x8xf32> to vector<8xf32>
    %62 = vector.shape_cast %61 : vector<8xf32> to vector<8x1xf32>
    %63 = vector.broadcast %62 : vector<8x1xf32> to vector<8x8xf32>
    %64 = arith.subf %60, %63 : vector<8x8xf32>
    %65 = math.exp %64 : vector<8x8xf32>
    %cst_27 = arith.constant dense<0.000000e+00> : vector<8xf32>
    %66 = vector.multi_reduction <add>, %65, %cst_27 [1] : vector<8x8xf32> to vector<8xf32>
    %67 = vector.shape_cast %66 : vector<8xf32> to vector<8x1xf32>
    %68 = tpu.reciprocal %67 {approx = true} : vector<8x1xf32> -> vector<8x1xf32>
    %69 = vector.broadcast %68 : vector<8x1xf32> to vector<8x8xf32>
    %70 = arith.mulf %65, %69 : vector<8x8xf32>
    %cst_28 = arith.constant dense<0.000000e+00> : vector<8x8xf32>
    %71 = tpu.matmul %70, %55, %cst_28 {dimension_numbers = #tpu.dot_dimension_numbers<[1], [0], [0], [1], [0, 0, 1, 1], [], []>} : vector<8x8xf32>, vector<8x8xf32>, vector<8x8xf32> -> vector<8x8xf32>
    %c0_29 = arith.constant 0 : index
    %c16 = arith.constant 16 : index
    %72 = vector.load %arg22[%c0_29, %c16] : memref<8x32xf32, #tpu.memory_space<vmem>>, vector<8x8xf32>
    tpu.vector_store %arg22[%c0_29, %c16], %71 {strides = array<i32>} : memref<8x32xf32, #tpu.memory_space<vmem>>, vector<8x8xf32>,
    %73 = vector.extract_strided_slice %12 {offsets = [0, 24], sizes = [8, 8], strides = [1, 1]} : vector<8x96xf32> to vector<8x8xf32>
    %74 = vector.extract_strided_slice %12 {offsets = [0, 56], sizes = [8, 8], strides = [1, 1]} : vector<8x96xf32> to vector<8x8xf32>
    %75 = vector.extract_strided_slice %12 {offsets = [0, 88], sizes = [8, 8], strides = [1, 1]} : vector<8x96xf32> to vector<8x8xf32>
    %cst_30 = arith.constant dense<0.000000e+00> : vector<8x8xf32>
    %76 = tpu.matmul %73, %74, %cst_30 {dimension_numbers = #tpu.dot_dimension_numbers<[1], [1], [0], [0], [0, 0, 1, 0], [], []>} : vector<8x8xf32>, vector<8x8xf32>, vector<8x8xf32> -> vector<8x8xf32>
    %cst_31 = arith.constant 0.353553385 : f32
    %77 = vector.broadcast %cst_31 : f32 to vector<8x8xf32>
    %78 = arith.mulf %76, %77 : vector<8x8xf32>
    %79 = vector.broadcast %5 : vector<1x8xf32> to vector<8x8xf32>
    %80 = arith.addf %78, %79 : vector<8x8xf32>
    %cst_32 = arith.constant dense<0xFF800000> : vector<8xf32>
    %81 = vector.multi_reduction <maximumf>, %80, %cst_32 [1] : vector<8x8xf32> to vector<8xf32>
    %82 = vector.shape_cast %81 : vector<8xf32> to vector<8x1xf32>
    %83 = vector.broadcast %82 : vector<8x1xf32> to vector<8x8xf32>
    %84 = arith.subf %80, %83 : vector<8x8xf32>
    %85 = math.exp %84 : vector<8x8xf32>
    %cst_33 = arith.constant dense<0.000000e+00> : vector<8xf32>
    %86 = vector.multi_reduction <add>, %85, %cst_33 [1] : vector<8x8xf32> to vector<8xf32>
    %87 = vector.shape_cast %86 : vector<8xf32> to vector<8x1xf32>
    %88 = tpu.reciprocal %87 {approx = true} : vector<8x1xf32> -> vector<8x1xf32>
    %89 = vector.broadcast %88 : vector<8x1xf32> to vector<8x8xf32>
    %90 = arith.mulf %85, %89 : vector<8x8xf32>
    %cst_34 = arith.constant dense<0.000000e+00> : vector<8x8xf32>
    %91 = tpu.matmul %90, %75, %cst_34 {dimension_numbers = #tpu.dot_dimension_numbers<[1], [0], [0], [1], [0, 0, 1, 1], [], []>} : vector<8x8xf32>, vector<8x8xf32>, vector<8x8xf32> -> vector<8x8xf32>
    %c0_35 = arith.constant 0 : index
    %c24 = arith.constant 24 : index
    %92 = vector.load %arg22[%c0_35, %c24] : memref<8x32xf32, #tpu.memory_space<vmem>>, vector<8x8xf32>
    tpu.vector_store %arg22[%c0_35, %c24], %91 {strides = array<i32>} : memref<8x32xf32, #tpu.memory_space<vmem>>, vector<8x8xf32>,
    %c0_36 = arith.constant 0 : index
    %c0_37 = arith.constant 0 : index
    %93 = vector.load %arg22[%c0_36, %c0_37] : memref<8x32xf32, #tpu.memory_space<vmem>>, vector<8x32xf32>
    %c0_38 = arith.constant 0 : index
    %c0_39 = arith.constant 0 : index
    %c0_40 = arith.constant 0 : index
    %94 = vector.load %arg8[%c0_38, %c0_39, %c0_40] : memref<1x32x32xf32, #tpu.memory_space<vmem>>, vector<1x32x32xf32>
    %95 = vector.shape_cast %94 : vector<1x32x32xf32> to vector<32x32xf32>
    %cst_41 = arith.constant dense<0.000000e+00> : vector<8x32xf32>
    %96 = tpu.matmul %93, %95, %cst_41 {dimension_numbers = #tpu.dot_dimension_numbers<[1], [0], [0], [1], [0, 0, 1, 1], [], []>} : vector<8x32xf32>, vector<32x32xf32>, vector<8x32xf32> -> vector<8x32xf32>
    %c0_42 = arith.constant 0 : index
    %c0_43 = arith.constant 0 : index
    %c0_44 = arith.constant 0 : index
    %97 = vector.load %arg9[%c0_42, %c0_43, %c0_44] : memref<1x1x32xf32, #tpu.memory_space<vmem>>, vector<1x1x32xf32>
    %98 = vector.shape_cast %97 : vector<1x1x32xf32> to vector<1x32xf32>
    %99 = vector.broadcast %98 : vector<1x32xf32> to vector<8x32xf32>
    %100 = arith.addf %96, %99 : vector<8x32xf32>
    %101 = arith.addf %100, %3 : vector<8x32xf32>
    %c0_45 = arith.constant 0 : index
    %c0_46 = arith.constant 0 : index
    %c0_47 = arith.constant 0 : index
    %102 = vector.load %arg10[%c0_45, %c0_46, %c0_47] : memref<1x1x32xf32, #tpu.memory_space<vmem>>, vector<1x1x32xf32>
    %103 = vector.shape_cast %102 : vector<1x1x32xf32> to vector<1x32xf32>
    %c0_48 = arith.constant 0 : index
    %c0_49 = arith.constant 0 : index
    %c0_50 = arith.constant 0 : index
    %104 = vector.load %arg11[%c0_48, %c0_49, %c0_50] : memref<1x1x32xf32, #tpu.memory_space<vmem>>, vector<1x1x32xf32>
    %105 = vector.shape_cast %104 : vector<1x1x32xf32> to vector<1x32xf32>
    %cst_51 = arith.constant dense<0.000000e+00> : vector<8xf32>
    %106 = vector.multi_reduction <add>, %101, %cst_51 [1] : vector<8x32xf32> to vector<8xf32>
    %107 = vector.shape_cast %106 : vector<8xf32> to vector<8x1xf32>
    %cst_52 = arith.constant 3.200000e+01 : f32
    %108 = vector.broadcast %cst_52 : f32 to vector<8x1xf32>
    %109 = arith.divf %107, %108 : vector<8x1xf32>
    %110 = vector.broadcast %109 : vector<8x1xf32> to vector<8x32xf32>
    %111 = arith.subf %101, %110 : vector<8x32xf32>
    %112 = arith.mulf %111, %111 : vector<8x32xf32>
    %cst_53 = arith.constant dense<0.000000e+00> : vector<8xf32>
    %113 = vector.multi_reduction <add>, %112, %cst_53 [1] : vector<8x32xf32> to vector<8xf32>
    %114 = vector.shape_cast %113 : vector<8xf32> to vector<8x1xf32>
    %cst_54 = arith.constant 3.200000e+01 : f32
    %115 = vector.broadcast %cst_54 : f32 to vector<8x1xf32>
    %116 = arith.divf %114, %115 : vector<8x1xf32>
    %117 = vector.broadcast %109 : vector<8x1xf32> to vector<8x32xf32>
    %118 = arith.subf %101, %117 : vector<8x32xf32>
    %cst_55 = arith.constant 9.99999974E-6 : f32
    %119 = vector.broadcast %cst_55 : f32 to vector<8x1xf32>
    %120 = arith.addf %116, %119 : vector<8x1xf32>
    %121 = math.rsqrt %120 : vector<8x1xf32>
    %122 = vector.broadcast %121 : vector<8x1xf32> to vector<8x32xf32>
    %123 = arith.mulf %118, %122 : vector<8x32xf32>
    %124 = vector.broadcast %103 : vector<1x32xf32> to vector<8x32xf32>
    %125 = arith.mulf %123, %124 : vector<8x32xf32>
    %126 = vector.broadcast %105 : vector<1x32xf32> to vector<8x32xf32>
    %127 = arith.addf %125, %126 : vector<8x32xf32>
    %c0_56 = arith.constant 0 : index
    %c0_57 = arith.constant 0 : index
    %c0_58 = arith.constant 0 : index
    %128 = vector.load %arg12[%c0_56, %c0_57, %c0_58] : memref<1x32x64xf32, #tpu.memory_space<vmem>>, vector<1x32x64xf32>
    %129 = vector.shape_cast %128 : vector<1x32x64xf32> to vector<32x64xf32>
    %cst_59 = arith.constant dense<0.000000e+00> : vector<8x64xf32>
    %130 = tpu.matmul %127, %129, %cst_59 {dimension_numbers = #tpu.dot_dimension_numbers<[1], [0], [0], [1], [0, 0, 1, 1], [], []>} : vector<8x32xf32>, vector<32x64xf32>, vector<8x64xf32> -> vector<8x64xf32>
    %c0_60 = arith.constant 0 : index
    %c0_61 = arith.constant 0 : index
    %c0_62 = arith.constant 0 : index
    %131 = vector.load %arg13[%c0_60, %c0_61, %c0_62] : memref<1x1x64xf32, #tpu.memory_space<vmem>>, vector<1x1x64xf32>
    %132 = vector.shape_cast %131 : vector<1x1x64xf32> to vector<1x64xf32>
    %133 = vector.broadcast %132 : vector<1x64xf32> to vector<8x64xf32>
    %134 = arith.addf %130, %133 : vector<8x64xf32>
    %cst_63 = arith.constant 5.000000e-01 : f32
    %135 = vector.broadcast %cst_63 : f32 to vector<8x64xf32>
    %136 = arith.mulf %135, %134 : vector<8x64xf32>
    %cst_64 = arith.constant 4.471500e-02 : f32
    %137 = vector.broadcast %cst_64 : f32 to vector<8x64xf32>
    %138 = arith.mulf %137, %134 : vector<8x64xf32>
    %139 = arith.mulf %138, %134 : vector<8x64xf32>
    %140 = arith.mulf %139, %134 : vector<8x64xf32>
    %141 = arith.addf %134, %140 : vector<8x64xf32>
    %cst_65 = arith.constant 0.797884583 : f32
    %142 = vector.broadcast %cst_65 : f32 to vector<8x64xf32>
    %143 = arith.mulf %142, %141 : vector<8x64xf32>
    %144 = math.tanh %143 : vector<8x64xf32>
    %cst_66 = arith.constant 1.000000e+00 : f32
    %145 = vector.broadcast %cst_66 : f32 to vector<8x64xf32>
    %146 = arith.addf %145, %144 : vector<8x64xf32>
    %147 = arith.mulf %136, %146 : vector<8x64xf32>
    %c0_67 = arith.constant 0 : index
    %c0_68 = arith.constant 0 : index
    %c0_69 = arith.constant 0 : index
    %148 = vector.load %arg14[%c0_67, %c0_68, %c0_69] : memref<1x64x32xf32, #tpu.memory_space<vmem>>, vector<1x64x32xf32>
    %149 = vector.shape_cast %148 : vector<1x64x32xf32> to vector<64x32xf32>
    %cst_70 = arith.constant dense<0.000000e+00> : vector<8x32xf32>
    %150 = tpu.matmul %147, %149, %cst_70 {dimension_numbers = #tpu.dot_dimension_numbers<[1], [0], [0], [1], [0, 0, 1, 1], [], []>} : vector<8x64xf32>, vector<64x32xf32>, vector<8x32xf32> -> vector<8x32xf32>
    %c0_71 = arith.constant 0 : index
    %c0_72 = arith.constant 0 : index
    %c0_73 = arith.constant 0 : index
    %151 = vector.load %arg15[%c0_71, %c0_72, %c0_73] : memref<1x1x32xf32, #tpu.memory_space<vmem>>, vector<1x1x32xf32>
    %152 = vector.shape_cast %151 : vector<1x1x32xf32> to vector<1x32xf32>
    %153 = vector.broadcast %152 : vector<1x32xf32> to vector<8x32xf32>
    %154 = arith.addf %150, %153 : vector<8x32xf32>
    %155 = arith.addf %154, %127 : vector<8x32xf32>
    %c0_74 = arith.constant 0 : index
    %c0_75 = arith.constant 0 : index
    %c0_76 = arith.constant 0 : index
    %156 = vector.load %arg16[%c0_74, %c0_75, %c0_76] : memref<1x1x32xf32, #tpu.memory_space<vmem>>, vector<1x1x32xf32>
    %157 = vector.shape_cast %156 : vector<1x1x32xf32> to vector<1x32xf32>
    %c0_77 = arith.constant 0 : index
    %c0_78 = arith.constant 0 : index
    %c0_79 = arith.constant 0 : index
    %158 = vector.load %arg17[%c0_77, %c0_78, %c0_79] : memref<1x1x32xf32, #tpu.memory_space<vmem>>, vector<1x1x32xf32>
    %159 = vector.shape_cast %158 : vector<1x1x32xf32> to vector<1x32xf32>
    %cst_80 = arith.constant dense<0.000000e+00> : vector<8xf32>
    %160 = vector.multi_reduction <add>, %155, %cst_80 [1] : vector<8x32xf32> to vector<8xf32>
    %161 = vector.shape_cast %160 : vector<8xf32> to vector<8x1xf32>
    %cst_81 = arith.constant 3.200000e+01 : f32
    %162 = vector.broadcast %cst_81 : f32 to vector<8x1xf32>
    %163 = arith.divf %161, %162 : vector<8x1xf32>
    %164 = vector.broadcast %163 : vector<8x1xf32> to vector<8x32xf32>
    %165 = arith.subf %155, %164 : vector<8x32xf32>
    %166 = arith.mulf %165, %165 : vector<8x32xf32>
    %cst_82 = arith.constant dense<0.000000e+00> : vector<8xf32>
    %167 = vector.multi_reduction <add>, %166, %cst_82 [1] : vector<8x32xf32> to vector<8xf32>
    %168 = vector.shape_cast %167 : vector<8xf32> to vector<8x1xf32>
    %cst_83 = arith.constant 3.200000e+01 : f32
    %169 = vector.broadcast %cst_83 : f32 to vector<8x1xf32>
    %170 = arith.divf %168, %169 : vector<8x1xf32>
    %171 = vector.broadcast %163 : vector<8x1xf32> to vector<8x32xf32>
    %172 = arith.subf %155, %171 : vector<8x32xf32>
    %cst_84 = arith.constant 9.99999974E-6 : f32
    %173 = vector.broadcast %cst_84 : f32 to vector<8x1xf32>
    %174 = arith.addf %170, %173 : vector<8x1xf32>
    %175 = math.rsqrt %174 : vector<8x1xf32>
    %176 = vector.broadcast %175 : vector<8x1xf32> to vector<8x32xf32>
    %177 = arith.mulf %172, %176 : vector<8x32xf32>
    %178 = vector.broadcast %157 : vector<1x32xf32> to vector<8x32xf32>
    %179 = arith.mulf %177, %178 : vector<8x32xf32>
    %180 = vector.broadcast %159 : vector<1x32xf32> to vector<8x32xf32>
    %181 = arith.addf %179, %180 : vector<8x32xf32>
    %c0_85 = arith.constant 0 : index
    %c0_86 = arith.constant 0 : index
    %182 = vector.load %arg21[%c0_85, %c0_86] : memref<8x32xf32, #tpu.memory_space<vmem>>, vector<8x32xf32>
    tpu.vector_store %arg21[%c0_85, %c0_86], %181 {strides = array<i32>} : memref<8x32xf32, #tpu.memory_space<vmem>>, vector<8x32xf32>,
    %c0_i32_87 = arith.constant 0 : i32
    %183 = arith.cmpi eq, %arg1, %c0_i32_87 : i32
    %184 = arith.extui %183 : i1 to i32
    %c0_i32_88 = arith.constant 0 : i32
    %185 = arith.cmpi ne, %184, %c0_i32_88 : i32
    scf.if %185 {
      %189 = vector.extract_strided_slice %181 {offsets = [0, 0], sizes = [1, 32], strides = [1, 1]} : vector<8x32xf32> to vector<1x32xf32>
      %c0_90 = arith.constant 0 : index
      %c0_91 = arith.constant 0 : index
      %190 = vector.load %arg23[%c0_90, %c0_91] : memref<1x32xf32, #tpu.memory_space<vmem>>, vector<1x32xf32>
      tpu.vector_store %arg23[%c0_90, %c0_91], %189 {strides = array<i32>} : memref<1x32xf32, #tpu.memory_space<vmem>>, vector<1x32xf32>,
    } else {
    }
    %c1_i32 = arith.constant 1 : i32
    %186 = arith.cmpi eq, %arg1, %c1_i32 : i32
    %187 = arith.extui %186 : i1 to i32
    %c0_i32_89 = arith.constant 0 : i32
    %188 = arith.cmpi ne, %187, %c0_i32_89 : i32
    scf.if %188 {
      %c0_90 = arith.constant 0 : index
      %c0_91 = arith.constant 0 : index
      %189 = vector.load %arg18[%c0_90, %c0_91] : memref<64x1xf32, #tpu.memory_space<vmem>>, vector<64x1xf32>
      %190 = vector.extract_strided_slice %181 {offsets = [0, 0], sizes = [1, 32], strides = [1, 1]} : vector<8x32xf32> to vector<1x32xf32>
      %191 = vector.extract_strided_slice %189 {offsets = [0, 0], sizes = [32, 1], strides = [1, 1]} : vector<64x1xf32> to vector<32x1xf32>
      %cst_92 = arith.constant dense<0.000000e+00> : vector<1x1xf32>
      %192 = tpu.matmul %190, %191, %cst_92 {dimension_numbers = #tpu.dot_dimension_numbers<[1], [0], [0], [1], [0, 0, 1, 1], [], []>} : vector<1x32xf32>, vector<32x1xf32>, vector<1x1xf32> -> vector<1x1xf32>
      %c0_93 = arith.constant 0 : index
      %c0_94 = arith.constant 0 : index
      %193 = vector.load %arg23[%c0_93, %c0_94] : memref<1x32xf32, #tpu.memory_space<vmem>>, vector<1x32xf32>
      %194 = vector.extract_strided_slice %189 {offsets = [32, 0], sizes = [32, 1], strides = [1, 1]} : vector<64x1xf32> to vector<32x1xf32>
      %cst_95 = arith.constant dense<0.000000e+00> : vector<1x1xf32>
      %195 = tpu.matmul %193, %194, %cst_95 {dimension_numbers = #tpu.dot_dimension_numbers<[1], [0], [0], [1], [0, 0, 1, 1], [], []>} : vector<1x32xf32>, vector<32x1xf32>, vector<1x1xf32> -> vector<1x1xf32>
      %196 = arith.addf %192, %195 : vector<1x1xf32>
      %c0_96 = arith.constant 0 : index
      %c0_97 = arith.constant 0 : index
      %197 = vector.load %arg19[%c0_96, %c0_97] : memref<1x1xf32, #tpu.memory_space<vmem>>, vector<1x1xf32>
      %198 = arith.addf %196, %197 : vector<1x1xf32>
      %c0_98 = arith.constant 0 : index
      %c0_99 = arith.constant 0 : index
      %c0_100 = arith.constant 0 : index
      %199 = vector.load %arg20[%c0_98, %c0_99, %c0_100] : memref<1x1x1xf32, #tpu.memory_space<vmem>>, vector<1x1x1xf32>
      %200 = vector.shape_cast %199 : vector<1x1x1xf32> to vector<1x1xf32>
      %201 = vector.shape_cast %198 : vector<1x1xf32> to vector<1x1x1xf32>
      tpu.vector_store %arg20[%c0_98, %c0_99, %c0_100], %201 {strides = array<i32>} : memref<1x1x1xf32, #tpu.memory_space<vmem>>, vector<1x1x1xf32>,
    } else {
    }
    return
  }
  func.func @transform_0(%arg0: i32, %arg1: i32) -> (i32, i32) {
    %c0_i32 = arith.constant 0 : i32
    %c0_i32_0 = arith.constant 0 : i32
    return %arg0, %c0_i32 : i32, i32
  }
  func.func @transform_1(%arg0: i32, %arg1: i32) -> (i32, i32) {
    %c0_i32 = arith.constant 0 : i32
    %c0_i32_0 = arith.constant 0 : i32
    %c0_i32_1 = arith.constant 0 : i32
    return %c0_i32, %c0_i32_0 : i32, i32
  }
  func.func @transform_2(%arg0: i32, %arg1: i32) -> (i32, i32) {
    %c0_i32 = arith.constant 0 : i32
    %c0_i32_0 = arith.constant 0 : i32
    %c0_i32_1 = arith.constant 0 : i32
    return %c0_i32, %c0_i32_0 : i32, i32
  }
  func.func @transform_3(%arg0: i32, %arg1: i32) -> (i32, i32, i32) {
    %c0_i32 = arith.constant 0 : i32
    %c0_i32_0 = arith.constant 0 : i32
    %c0_i32_1 = arith.constant 0 : i32
    return %arg0, %c0_i32, %c0_i32_0 : i32, i32, i32
  }
  func.func @transform_4(%arg0: i32, %arg1: i32) -> (i32, i32, i32) {
    %c0_i32 = arith.constant 0 : i32
    %c0_i32_0 = arith.constant 0 : i32
    %c0_i32_1 = arith.constant 0 : i32
    return %arg1, %c0_i32, %c0_i32_0 : i32, i32, i32
  }
  func.func @transform_5(%arg0: i32, %arg1: i32) -> (i32, i32, i32) {
    %c0_i32 = arith.constant 0 : i32
    %c0_i32_0 = arith.constant 0 : i32
    %c0_i32_1 = arith.constant 0 : i32
    return %arg1, %c0_i32, %c0_i32_0 : i32, i32, i32
  }
  func.func @transform_6(%arg0: i32, %arg1: i32) -> (i32, i32, i32) {
    %c0_i32 = arith.constant 0 : i32
    %c0_i32_0 = arith.constant 0 : i32
    %c0_i32_1 = arith.constant 0 : i32
    return %arg1, %c0_i32, %c0_i32_0 : i32, i32, i32
  }
  func.func @transform_7(%arg0: i32, %arg1: i32) -> (i32, i32, i32) {
    %c0_i32 = arith.constant 0 : i32
    %c0_i32_0 = arith.constant 0 : i32
    %c0_i32_1 = arith.constant 0 : i32
    return %arg1, %c0_i32, %c0_i32_0 : i32, i32, i32
  }
  func.func @transform_8(%arg0: i32, %arg1: i32) -> (i32, i32, i32) {
    %c0_i32 = arith.constant 0 : i32
    %c0_i32_0 = arith.constant 0 : i32
    %c0_i32_1 = arith.constant 0 : i32
    return %arg1, %c0_i32, %c0_i32_0 : i32, i32, i32
  }
  func.func @transform_9(%arg0: i32, %arg1: i32) -> (i32, i32, i32) {
    %c0_i32 = arith.constant 0 : i32
    %c0_i32_0 = arith.constant 0 : i32
    %c0_i32_1 = arith.constant 0 : i32
    return %arg1, %c0_i32, %c0_i32_0 : i32, i32, i32
  }
  func.func @transform_10(%arg0: i32, %arg1: i32) -> (i32, i32, i32) {
    %c0_i32 = arith.constant 0 : i32
    %c0_i32_0 = arith.constant 0 : i32
    %c0_i32_1 = arith.constant 0 : i32
    return %arg1, %c0_i32, %c0_i32_0 : i32, i32, i32
  }
  func.func @transform_11(%arg0: i32, %arg1: i32) -> (i32, i32, i32) {
    %c0_i32 = arith.constant 0 : i32
    %c0_i32_0 = arith.constant 0 : i32
    %c0_i32_1 = arith.constant 0 : i32
    return %arg1, %c0_i32, %c0_i32_0 : i32, i32, i32
  }
  func.func @transform_12(%arg0: i32, %arg1: i32) -> (i32, i32, i32) {
    %c0_i32 = arith.constant 0 : i32
    %c0_i32_0 = arith.constant 0 : i32
    %c0_i32_1 = arith.constant 0 : i32
    return %arg1, %c0_i32, %c0_i32_0 : i32, i32, i32
  }
  func.func @transform_13(%arg0: i32, %arg1: i32) -> (i32, i32, i32) {
    %c0_i32 = arith.constant 0 : i32
    %c0_i32_0 = arith.constant 0 : i32
    %c0_i32_1 = arith.constant 0 : i32
    return %arg1, %c0_i32, %c0_i32_0 : i32, i32, i32
  }
  func.func @transform_14(%arg0: i32, %arg1: i32) -> (i32, i32, i32) {
    %c0_i32 = arith.constant 0 : i32
    %c0_i32_0 = arith.constant 0 : i32
    %c0_i32_1 = arith.constant 0 : i32
    return %arg1, %c0_i32, %c0_i32_0 : i32, i32, i32
  }
  func.func @transform_15(%arg0: i32, %arg1: i32) -> (i32, i32, i32) {
    %c0_i32 = arith.constant 0 : i32
    %c0_i32_0 = arith.constant 0 : i32
    %c0_i32_1 = arith.constant 0 : i32
    return %arg1, %c0_i32, %c0_i32_0 : i32, i32, i32
  }
  func.func @transform_16(%arg0: i32, %arg1: i32) -> (i32, i32) {
    %c0_i32 = arith.constant 0 : i32
    %c0_i32_0 = arith.constant 0 : i32
    %c0_i32_1 = arith.constant 0 : i32
    return %c0_i32, %c0_i32_0 : i32, i32
  }
  func.func @transform_17(%arg0: i32, %arg1: i32) -> (i32, i32) {
    %c0_i32 = arith.constant 0 : i32
    %c0_i32_0 = arith.constant 0 : i32
    %c0_i32_1 = arith.constant 0 : i32
    return %c0_i32, %c0_i32_0 : i32, i32
  }
  func.func @transform_18(%arg0: i32, %arg1: i32) -> (i32, i32, i32) {
    %c0_i32 = arith.constant 0 : i32
    %c0_i32_0 = arith.constant 0 : i32
    %c0_i32_1 = arith.constant 0 : i32
    return %arg0, %c0_i32, %c0_i32_0 : i32, i32, i32
  }
}

</mosaic_0001>

<bundles_post_ra>
// kernel: roberta_forward.1
= control target key start
LH: loop header
LB: loop body
LE: loop exit
PB: predicated region body
PF: predicated region fallthrough
CT: control target
= control target key end

     0   :  { %s1888_s29 = smov 0   ;;  %s1890_s30 = smov 0   ;;  %s2171_s0 = inlined_call_operand.vmem [shape: f32[16,32], index: 0, kind: input, shape index: {}]   ;;  %s2172_s1 = inlined_call_operand.vmem [shape: f32[1,32], index: 1, kind: input, shape index: {}]   ;;  %s2173_s2 = inlined_call_operand.vmem [shape: f32[1,32], index: 2, kind: input, shape index: {}]   ;;  %s2174_s3 = inlined_call_operand.vmem [shape: f32[2,1,8], index: 3, kind: input, shape index: {}]   ;;  %s2175_s4 = inlined_call_operand.vmem [shape: f32[2,32,96], index: 4, kind: input, shape index: {}]   ;;  %s2176_s5 = inlined_call_operand.vmem [shape: f32[2,1,96], index: 5, kind: input, shape index: {}]   ;;  %s2177_s6 = inlined_call_operand.vmem [shape: f32[2,32,32], index: 6, kind: input, shape index: {}]   ;;  %s2178_s7 = inlined_call_operand.vmem [shape: f32[2,1,32], index: 7, kind: input, shape index: {}]   ;;  %s2179_s8 = inlined_call_operand.vmem [shape: f32[2,1,32], index: 8, kind: input, shape index: {}]   ;;  %s2180_s9 = inlined_call_operand.vmem [shape: f32[2,1,32], index: 9, kind: input, shape index: {}]   ;;  %s2181_s10 = inlined_call_operand.vmem [shape: f32[2,32,64], index: 10, kind: input, shape index: {}]   ;;  %s2182_s11 = inlined_call_operand.vmem [shape: f32[2,1,64], index: 11, kind: input, shape index: {}]   ;;  %s2183_s12 = inlined_call_operand.vmem [shape: f32[2,64,32], index: 12, kind: input, shape index: {}]   ;;  %s2184_s13 = inlined_call_operand.vmem [shape: f32[2,1,32], index: 13, kind: input, shape index: {}]   ;;  %s2185_s14 = inlined_call_operand.vmem [shape: f32[2,1,32], index: 14, kind: input, shape index: {}]   ;;  %s2186_s15 = inlined_call_operand.vmem [shape: f32[2,1,32], index: 15, kind: input, shape index: {}]   ;;  %s2187_s16 = inlined_call_operand.vmem [shape: f32[64,1], index: 16, kind: input, shape index: {}]   ;;  %s2188_s17 = inlined_call_operand.<no memory space> [shape: f32[1,1], index: 17, kind: input, shape index: {}]   ;;  %s2189_s18 = inlined_call_operand.vmem [shape: f32[2,1,1], index: 18, kind: output, shape index: {}]  }
   0x1   :  { %2196 = sst [smem:[#allocation12_spill]] %s2171_s0  ;;  %v23_v0 = vstv %s2188_s17  ;;  %s1892_s0 = smov 0  }
   0x2   :  { %2197 = sst [smem:[#allocation13_spill]] %s2172_s1  ;;  %24 = vst [vmem:[#allocation5] sm:$0x1] %v23_v0  ;;  %s1894_s19 = smov 0  }
   0x3   :  { %2198 = sst [smem:[#allocation14_spill]] %s2173_s2  ;;  %s1896_s1 = smov 0  }
   0x4   :  { %2199 = sst [smem:[#allocation15_spill]] %s2174_s3 }
   0x5   :  { %2200 = sst [smem:[#allocation16_spill]] %s2175_s4 }
   0x6   :  { %2201 = sst [smem:[#allocation17_spill]] %s2177_s6 }
   0x7   :  { %2202 = sst [smem:[#allocation18_spill]] %s2180_s9 }
   0x8   :  { %2203 = sst [smem:[#allocation19_spill]] %s2181_s10 }
   0x9   :  { %2204 = sst [smem:[#allocation20_spill]] %s2182_s11 }
   0xa   :  { %2205 = sst [smem:[#allocation21_spill]] %s2186_s15 }
   0xb   :  { %2206 = sst [smem:[#allocation22_spill]] %s2187_s16 }
   0xc   :  { %2207 = sst [smem:[#allocation23_spill]] %s2189_s18 }
   0xd LB: > { %2208 = sst [smem:[#allocation6_spill]] %s1756_s29  ;;  %s39_s17 = sadd.s32 1, %s1764_s0  ;;  %s1772_s1 = sphi %s1896_s1, %s30_s1   ;;  %s1768_s19 = sphi %s1894_s19, %s2245_s19   ;;  %s1764_s0 = sphi %s1892_s0, %s2244_s0   ;;  %s1760_s30 = sphi %s1890_s30, %s2243_s30   ;;  %s1756_s29 = sphi %s1888_s29, %s2242_s29  }
   0xe   : > { %2209 = sst [smem:[#allocation7_spill]] %s1764_s0  ;;  %s42_s20 = sadd.s32 1, %s1768_s19 }
   0xf   : > { %2210 = sst [smem:[#allocation8_spill]] %s1768_s19  ;;  %p40_p0 = scmp.ge.s32.totalorder %s39_s17, 2 }
  0x10   : > { %2211 = sst [smem:[#allocation9_spill]] %s1772_s1  ;;  %p1602_p1 = scmp.ge.s32.totalorder %s1772_s1, 1 }
  0x11   : > { %p637_p2 = scmp.lt.s32.totalorder %s1772_s1, 5  ;;  %s2247_s17 = smov (%p40_p0, %s39_s17), 0 }
  0x12   : > { %2212 = sst [smem:[#allocation10_spill]] %s2247_s17  ;;  %s2249_s20 = smov (!%p40_p0, %s42_s20), %s1768_s19 }
  0x13   : > { %p638_p3 = pnand %p1602_p1, %p637_p2  ;;  %p44_p4 = scmp.ge.s32.totalorder %s2249_s20, 2 }
  0x14   : > { %p735_p5 = scmp.lt.s32.totalorder (!%p638_p3), %s1760_s30, 1  ;;  %p742_p6 = scmp.lt.s32.totalorder (!%p638_p3), %s1756_s29, 1 }
  0x15   : > { %s2251_s20 = smov (%p44_p4, %s2249_s20), 0  ;;  %641 = sbr.rel (%p638_p3) target bundleno = 2731 (0xaab), region = 92 }
  0x16   : > { %2213 = sst [smem:[#allocation11_spill]] %s2251_s20 }
  0x17   : > { %s2215_s27 = sld [smem:[#allocation12_spill]] (!%p638_p3) }
  0x18   : > { %s2216_s4 = sld [smem:[#allocation16_spill]] (!%p638_p3) }
  0x19   : > { %s2217_s6 = sld [smem:[#allocation17_spill]] (!%p638_p3) }
  0x1a   : > { %s2253_s30 = smov (!%p735_p5, %s1760_s30), 1  ;;  %s2219_s10 = sld [smem:[#allocation19_spill]] }
  0x1b   : > { %s1924_s21 = scalar_select %p742_p6, %s1756_s29, 1 }
  0x1c   : > { %s1603_s22 = sshll.u32 %s2253_s30, 3  ;;  %s2222_s29 = sld [smem:[#allocation23_spill]] }
  0x1d   : > { %s738_s28 = scalar_lea.vmem %s2215_s27, %s1603_s22  ;;  %s1635_s20 = sshll.u32 %s1924_s21, 5 }
  0x1e   : > { %s1938_s0 = scalar_lea.vmem %s2216_s4, %s1635_s20  ;;  %s779_s25 = scalar_lea.vmem %s2184_s13, %s1924_s21 }
  0x1f   : > { %s1947_s2 = scalar_lea.vmem %s2217_s6, %s1635_s20  ;;  %s1638_s6 = sshll.u32 %s1924_s21, 6 }
  0x20   : > { %s1964_s1 = scalar_lea.vmem %s2219_s10, %s1635_s20  ;;  %s1978_s27 = scalar_lea.vmem %s2183_s12, %s1638_s6 }
  0x21   : > { %s782_s3 = scalar_lea.vmem %s2185_s14, %s1924_s21  ;;  %s2221_s4 = sld [smem:[#allocation21_spill]] }
  0x22   : > { %s788_s11 = scalar_lea.vmem %s2222_s29, %s2253_s30  ;;  %s2223_s9 = sld [smem:[#allocation6_spill]] }
  0x27   : > { %s785_s10 = scalar_lea.vmem %s2221_s4, %s1924_s21 }
  0x28   : > { %p1612_p7 = scmp.ne.s32.totalorder %s2223_s9, 0 }
  0x29   : > { %s2224_s9 = sld [smem:[#allocation13_spill]] (!%p1612_p7) }
  0x2a   : > { %792 = sbr.rel (%p1612_p7) target bundleno = 318 (0x13e), region = 96  ;;  %s2225_s24 = sld [smem:[#allocation14_spill]] (!%p1612_p7) }
  0x2f   : > { %v793_v1 = vld [vmem:[%s738_s28] sm:$0xff]  ;;  %vm796_vm0 = vcmask 261120   ;;  %v1774_v3 = vmov 32.0   ;;  %vm835_vm5 = vcmask 253952  }
  0x30   : > { %v797_v2 = vsel %vm796_vm0, %v793_v1, 0.0  ;;  %1697 = vrcp.f32 %v1774_v3  ;;  %v1695_v24 = vld [vmem:[%s2224_s9] ss:$0 sm:$0xff] }
  0x31   : > { %798 = vadd.xlane.f32.xlu0 %v797_v2  ;;  %v1696_v26 = vld [vmem:[%s2225_s24] ss:$0 sm:$0xff] }
  0x36   : > { %v1698_v4 = vpop.eup %1697 }
  0x37   : > { %v801_v5 = vmul.f32 32.0, %v1698_v4  ;;  %vm805_vm1 = vweird.f32 %v1698_v4 }
  0x39   : > { %v802_v6 = vsub.f32 1.0, %v801_v5 }
  0x3b   : > { %v803_v7 = vmul.f32 %v1698_v4, %v802_v6 }
  0x3d   : > { %v804_v8 = vadd.f32 %v1698_v4, %v803_v7 }
  0x3f   : > { %v806_v9 = vsel %vm805_vm1, %v1698_v4, %v804_v8 }
  0xa4   : > { %v799_v10 = vpop.xlane.xlu0 %798 }
  0xa5   : > { %v807_v11 = vmul.f32 %v806_v9, %v799_v10 }
  0xa7   : > { %v808_v12 = vsub.f32 %v793_v1, %v807_v11 }
  0xa9   : > { %v809_v13 = vmul.f32 %v808_v12, %v808_v12 }
  0xab   : > { %v810_v14 = vsel %vm796_vm0, %v809_v13, 0.0 }
  0xac   : > { %811 = vadd.xlane.f32.xlu0 %v810_v14 }
 0x11f   : > { %v812_v15 = vpop.xlane.xlu0 %811 }
 0x120   : > { %v813_v16 = vmul.f32 %v812_v15, %v806_v9 }
 0x122   : > { %v814_v17 = vadd.f32 1e-05, %v813_v16 }
 0x124   : > { %1699 = vrsqrt.f32 %v814_v17  ;;  %vm821_vm3 = vweird.f32 %v814_v17 }
 0x12a   : > { %v1700_v18 = vpop.eup %1699 }
 0x12b   : > { %v816_v19 = vmul.f32 %v1700_v18, %v814_v17  ;;  %vm822_vm2 = vweird.f32 %v1700_v18 }
 0x12c   : > { %vm823_vm4 = vmor %vm821_vm3, %vm822_vm2 }
 0x12d   : > { %v817_v20 = vmul.f32 %v1700_v18, %v816_v19 }
 0x12f   : > { %v818_v21 = vmul.f32 0.5, %v817_v20 }
 0x131   : > { %v819_v22 = vsub.f32 1.5, %v818_v21 }
 0x133   : > { %v820_v23 = vmul.f32 %v1700_v18, %v819_v22 }
 0x135   : > { %v824_v25 = vsel %vm823_vm4, %v1700_v18, %v820_v23 }
 0x136   : > { %v825_v27 = vmul.f32 %v824_v25, %v808_v12 }
 0x138   : > { %v829_v28 = vmul.f32 %v1695_v24, %v825_v27 }
 0x13a   : > { %v833_v29 = vadd.f32 %v1696_v26, %v829_v28 }
 0x13c   : > { %834 = vst.msk [vmem:[#allocation2] sm:$0xff] %vm796_vm0, %v833_v29 }
 0x13d   : > { %836 = vst.msk [vmem:[#allocation4] sm:$0x1] %vm835_vm5, %v833_v29 }
 0x13e PF: > { %v842_v30 = vld [vmem:[%s1938_s0 + $0x18] sm:$0xff]  ;;  %v841_v31 = vld [vmem:[%s1938_s0 + $0x10] sm:$0xff]  ;;  %v840_v32 = vld [vmem:[%s1938_s0 + $0x8] sm:$0xff]  ;;  %vm847_vm6 = vcmask 261120   ;;  %s2226_s26 = scalar_lea.vmem %s2176_s5, %s1924_s21  ;;  %s1775_s19 = smov 64   ;;  %vm874_vm7 = vcmask 64512  }
 0x13f   : > { %863 = vmatpush.msra.mxu0 %v842_v30  ;;  %v839_v33 = vld [vmem:[%s1938_s0] sm:$0xff]  ;;  %s1776_s0 = smov 120   ;;  %s1777_s17 = smov 96   ;;  %vm1013_vm8 = vcmask 130112   ;;  %vm1086_vm9 = vcmask 195712   ;;  %vm1159_vm10 = vcmask 261312  }
 0x140   : > { %v1701_v35 = vld [vmem:[%s2226_s26] ss:$0 sm:$0xff]  ;;  %s1778_s20 = smov 56   ;;  %s1779_s16 = smov 88   ;;  %vm1285_vm15 = vcmask 523264  }
 0x141   : > { %864 = vmatpush.msra.mxu0 %v841_v31  ;;  %s2227_s4 = sld [smem:[#allocation15_spill]]  ;;  %s1780_s9 = smov 104  }
 0x142   : > { %s1781_s29 = smov 72   ;;  %s1782_s28 = smov 80  }
 0x143   : > { %865 = vmatpush.msra.mxu0 %v840_v32  ;;  %v2008_v34 = vld [vmem:[#allocation2] sm:$0xff]  ;;  %s1783_s24 = smov 112   ;;  %s1784_s23 = smov 40  }
 0x144   : > { %s1785_s22 = smov 8   ;;  %s1786_s26 = smov 48  }
 0x145   : > { %866 = vmatpush.msra.mxu0 %v839_v33  ;;  %s2230_s15 = scalar_lea.vmem %s2179_s8, %s1924_s21 }
 0x146   : > { %1613 = vmatmul.msk.f32.vlgmr.msra.gmra.mxu0 %vm847_vm6, %v2008_v34 }
 0x147   : > { %s2228_s6 = scalar_lea.vmem %s2227_s4, %s2253_s30 }
 0x148   : > { %v1702_v43 = vld [vmem:[%s2228_s6] ss:$0 sm:$0xff]  ;;  %s2231_s6 = sld [smem:[#allocation18_spill]] }
 0x1c3   : > { %v868_v36 = vpop.f32.mrf.mxu0 }
 0x1c4   : > { %v2017_v37 = vadd.f32 %v1701_v35, %v868_v36 }
 0x1c6   : > { %915 = vrot.lane.b32.xlu2 %v2017_v37, %s1775_s19  ;;  %942 = vrot.lane.b32.xlu1 %v2017_v37, %s1776_s0  ;;  %s1787_s19 = smov 24   ;;  %s1788_s0 = smov 16  }
 0x1c7   : > { %872 = vrot.lane.b32.xlu0 %v2017_v37, %s1777_s17 }
 0x1ce   : > { %983 = vrot.lane.b32.xlu2 %v2017_v37, %s1778_s20 }
 0x1cf   : > { %944 = vrot.lane.b32.xlu0 %v2017_v37, %s1779_s16  ;;  %s2229_s16 = scalar_lea.vmem %s2178_s7, %s1924_s21 }
 0x220   : > { %v916_v38 = vpop.permute.xlu2 %915 }
 0x221   : > { %936 = vmatpush.msra.mxu2 %v916_v38 }
 0x228   : > { %v984_v39 = vpop.permute.xlu2 %983 }
 0x229   : > { %1004 = vmatpush.msrb.mxu2 %v984_v39 }
 0x238   : > { %v943_v42 = vpop.permute.xlu1 %942 }
 0x239   : > { %v873_v40 = vpop.permute.xlu0 %872 }
 0x23a   : > { %1614 = vmatpush.xpose.msk.msra.mxu1 %vm874_vm7, %v873_v40  ;;  %v1165_v40 = vld [vmem:[%s1947_s2 + $0x18] sm:$0xff] }
 0x23d   : > { %1615 = vmatmul.msk.f32.vlgmr.msra.gmra.mxu1 %vm874_vm7, %v2017_v37 }
 0x241   : > { %v945_v41 = vpop.permute.xlu0 %944 }
 0x242   : > { %1617 = vmatpush.xpose.msk.msra.mxu3 %vm874_vm7, %v945_v41  ;;  %v1164_v41 = vld [vmem:[%s1947_s2 + $0x10] sm:$0xff] }
 0x245   : > { %1618 = vmatmul.msk.f32.vlgmr.msra.gmra.mxu3 %vm874_vm7, %v943_v42  ;;  %v1163_v42 = vld [vmem:[%s1947_s2 + $0x8] sm:$0xff] }
 0x2ba   : > { %v896_v44 = vpop.f32.mrf.mxu1 }
 0x2bb   : > { %v899_v45 = vmul.f32 0.35355338, %v896_v44 }
 0x2bd   : > { %v903_v46 = vadd.f32 %v1702_v43, %v899_v45 }
 0x2bf   : > { %v904_v47 = vsel %vm874_vm7, %v903_v46, -inf }
 0x2c0   : > { %905 = vmax.xlane.f32.xlu1 %v904_v47  ;;  %v1703_v47 = vld [vmem:[%s2229_s16] ss:$0 sm:$0xff] }
 0x2c8   : > { %v967_v48 = vpop.f32.mrf.mxu3 }
 0x2c9   : > { %v970_v49 = vmul.f32 0.35355338, %v967_v48 }
 0x2cb   : > { %v971_v50 = vadd.f32 %v1702_v43, %v970_v49 }
 0x2cd   : > { %v972_v51 = vsel %vm874_vm7, %v971_v50, -inf }
 0x2ce   : > { %973 = vmax.xlane.f32.xlu2 %v972_v51 }
 0x2d9   : > { %1088 = vrot.lane.b32.xlu1 %v2017_v37, %s1780_s9  ;;  %s2232_s9 = scalar_lea.vmem %s2231_s6, %s1924_s21 }
 0x2e6   : > { %1090 = vrot.lane.b32.xlu2 %v2017_v37, %s1781_s29 }
 0x333   : > { %v906_v52 = vpop.xlane.xlu1 %905 }
 0x334   : > { %v907_v53 = vsub.f32 %v903_v46, %v906_v52  ;;  %v1789_v52 = vmov 32.0  }
 0x336   : > { %v908_v54 = vmul.f32 1.442695, %v907_v53 }
 0x338   : > { %1710 = vpow2.f32 %v908_v54 }
 0x33e   : > { %v1711_v55 = vpop.eup %1710 }
 0x33f   : > { %v910_v56 = vsel %vm874_vm7, %v1711_v55, 0.0 }
 0x340   : > { %911 = vadd.xlane.f32.xlu2 %v910_v56 }
 0x341   : > { %v974_v57 = vpop.xlane.xlu2 %973 }
 0x342   : > { %v975_v58 = vsub.f32 %v971_v50, %v974_v57 }
 0x344   : > { %v976_v59 = vmul.f32 1.442695, %v975_v58 }
 0x346   : > { %1712 = vpow2.f32 %v976_v59 }
 0x349   : > { %v1091_v62 = vpop.permute.xlu2 %1090 }
 0x34b   : > { %v1089_v6 = vpop.permute.xlu1 %1088 }
 0x34c   : > { %v1713_v60 = vpop.eup %1712 }
 0x34d   : > { %v978_v61 = vsel %vm874_vm7, %v1713_v60, 0.0 }
 0x34e   : > { %979 = vadd.xlane.f32.xlu0 %v978_v61 }
 0x358   : > { %1017 = vrot.lane.b32.xlu2 %v2017_v37, %s1782_s28 }
 0x362   : > { %1015 = vrot.lane.b32.xlu0 %v2017_v37, %s1783_s24  ;;  %s2233_s24 = sld [smem:[#allocation20_spill]] }
 0x3b3   : > { %v912_v63 = vpop.xlane.xlu2 %911 }
 0x3b4   : > { %1714 = vrcp.f32 %v912_v63  ;;  %v1236_v63 = vld [vmem:[%s1964_s1 + $0x18] sm:$0xff] }
 0x3ba   : > { %v1715_v0 = vpop.eup %1714 }
 0x3bb   : > { %v1018_v1 = vpop.permute.xlu2 %1017  ;;  %v914_v2 = vmul.f32 %v1715_v0, %v1711_v55  ;;  %v1235_v0 = vld [vmem:[%s1964_s1 + $0x10] sm:$0xff] }
 0x3bc   : > { %1620 = vmatpush.xpose.msk.msrb.mxu1 %vm874_vm7, %v1018_v1  ;;  %v1234_v1 = vld [vmem:[%s1964_s1 + $0x8] sm:$0xff] }
 0x3bd   : > { %1616 = vmatmul.msk.f32.vlgmr.msra.gmra.mxu2 %vm874_vm7, %v914_v2  ;;  %v1233_v2 = vld [vmem:[%s1964_s1] sm:$0xff] }
 0x3be   : > { %1623 = vmatpush.xpose.msk.msra.mxu2 %vm874_vm7, %v1091_v62 }
 0x3c0   : > { %1185 = vmatpush.msra.mxu1 %v1165_v40 }
 0x3c1   : > { %v980_v3 = vpop.xlane.xlu0 %979 }
 0x3c2   : > { %1716 = vrcp.f32 %v980_v3  ;;  %1186 = vmatpush.msra.mxu1 %v1164_v41 }
 0x3c4   : > { %1187 = vmatpush.msra.mxu1 %v1163_v42 }
 0x3c8   : > { %v1717_v4 = vpop.eup %1716 }
 0x3c9   : > { %v982_v5 = vmul.f32 %v1717_v4, %v1713_v60 }
 0x3cb   : > { %1619 = vmatmul.msk.f32.vlgmr.msrb.gmra.mxu2 %vm874_vm7, %v982_v5 }
 0x3d3   : > { %1624 = vmatmul.msk.f32.vlgmr.msra.gmra.mxu2 %vm874_vm7, %v1089_v6 }
 0x3d4   : > { %v1016_v7 = vpop.permute.xlu0 %1015 }
 0x3d5   : > { %1621 = vmatmul.msk.f32.vlgmr.msrb.gmra.mxu1 %vm874_vm7, %v1016_v7 }
 0x440   : > { %v938_v8 = vpop.f32.mrf.mxu2 }
 0x441   : > { %941 = vst.msk [vmem:[#allocation3] sm:$0xff] %vm874_vm7, %v938_v8 }
 0x44e   : > { %v1006_v9 = vpop.f32.mrf.mxu2 }
 0x452   : > { %v1040_v10 = vpop.f32.mrf.mxu1 }
 0x453   : > { %v1043_v11 = vmul.f32 0.35355338, %v1040_v10 }
 0x455   : > { %v1044_v12 = vadd.f32 %v1702_v43, %v1043_v11 }
 0x456   : > { %v1113_v13 = vpop.f32.mrf.mxu2 }
 0x457   : > { %v1116_v14 = vmul.f32 0.35355338, %v1113_v13  ;;  %v1045_v15 = vsel %vm874_vm7, %v1044_v12, -inf }
 0x458   : > { %1046 = vmax.xlane.f32.xlu2 %v1045_v15  ;;  %v1705_v15 = vld [vmem:[%s2232_s9] ss:$0 sm:$0xff] }
 0x459   : > { %v1117_v16 = vadd.f32 %v1702_v43, %v1116_v14  ;;  %v1162_v43 = vld [vmem:[%s1947_s2] sm:$0xff] }
 0x45a   : > { %1188 = vmatpush.msra.mxu1 %v1162_v43 }
 0x45b   : > { %v1118_v17 = vsel %vm874_vm7, %v1117_v16, -inf }
 0x45c   : > { %1119 = vmax.xlane.f32.xlu1 %v1118_v17 }
 0x475   : > { %1129 = vrot.lane.b32.xlu1 %v2017_v37, %s1784_s23  ;;  %s2234_s23 = scalar_lea.vmem %s2233_s24, %s1924_s21 }
 0x4cb   : > { %v1047_v18 = vpop.xlane.xlu2 %1046 }
 0x4cc   : > { %v1048_v19 = vsub.f32 %v1044_v12, %v1047_v18  ;;  %v1704_v12 = vld [vmem:[%s2230_s15] ss:$0 sm:$0xff]  ;;  %v1280_v18 = vld [vmem:[%s1978_s27 + $0x38] sm:$0xff] }
 0x4cd   : > { %1297 = vmatpush.msrb.mxu0 %v1280_v18 }
 0x4ce   : > { %v1049_v20 = vmul.f32 1.442695, %v1048_v19  ;;  %v1279_v19 = vld [vmem:[%s1978_s27 + $0x30] sm:$0xff] }
 0x4cf   : > { %v1120_v21 = vpop.xlane.xlu1 %1119  ;;  %1298 = vmatpush.msrb.mxu0 %v1279_v19 }
 0x4d0   : > { %1718 = vpow2.f32 %v1049_v20  ;;  %v1121_v22 = vsub.f32 %v1117_v16, %v1120_v21  ;;  %v1278_v20 = vld [vmem:[%s1978_s27 + $0x28] sm:$0xff]  ;;  %v1277_v21 = vld [vmem:[%s1978_s27 + $0x20] sm:$0xff] }
 0x4d1   : > { %1299 = vmatpush.msrb.mxu0 %v1278_v20 }
 0x4d2   : > { %v1122_v23 = vmul.f32 1.442695, %v1121_v22  ;;  %v1276_v22 = vld [vmem:[%s1978_s27 + $0x18] sm:$0xff] }
 0x4d3   : > { %1300 = vmatpush.msrb.mxu0 %v1277_v21 }
 0x4d4   : > { %1720 = vpow2.f32 %v1122_v23  ;;  %v1275_v23 = vld [vmem:[%s1978_s27 + $0x10] sm:$0xff] }
 0x4d5   : > { %1301 = vmatpush.msrb.mxu0 %v1276_v22 }
 0x4d6   : > { %v1719_v24 = vpop.eup %1718 }
 0x4d7   : > { %v1051_v25 = vsel %vm874_vm7, %v1719_v24, 0.0  ;;  %1302 = vmatpush.msrb.mxu0 %v1275_v23 }
 0x4d8   : > { %1052 = vadd.xlane.f32.xlu0 %v1051_v25  ;;  %v1273_v25 = vld [vmem:[%s1978_s27] sm:$0xff] }
 0x4da   : > { %v1721_v26 = vpop.eup %1720 }
 0x4db   : > { %v1124_v27 = vsel %vm874_vm7, %v1721_v26, 0.0 }
 0x4dc   : > { %1125 = vadd.xlane.f32.xlu2 %v1124_v27 }
 0x4e7   : > { %v1130_v28 = vpop.permute.xlu1 %1129 }
 0x4e8   : > { %1150 = vmatpush.msrb.mxu2 %v1130_v28 }
 0x4ec   : > { %1010 = vrot.lane.b32.xlu0 %v1006_v9, %s1785_s22 }
 0x4f4   : > { %1056 = vrot.lane.b32.xlu2 %v2017_v37, %s1786_s26 }
 0x54b   : > { %v1053_v29 = vpop.xlane.xlu0 %1052 }
 0x54c   : > { %1722 = vrcp.f32 %v1053_v29 }
 0x54f   : > { %v1126_v30 = vpop.xlane.xlu2 %1125 }
 0x550   : > { %1724 = vrcp.f32 %v1126_v30 }
 0x551   : > { %1726 = vrcp.f32 %v1789_v52 }
 0x552   : > { %v1723_v31 = vpop.eup %1722 }
 0x553   : > { %v1055_v36 = vmul.f32 %v1723_v31, %v1719_v24  ;;  %v1274_v24 = vld [vmem:[%s1978_s27 + $0x8] sm:$0xff] }
 0x554   : > { %1303 = vmatpush.msrb.mxu0 %v1274_v24 }
 0x556   : > { %v1725_v32 = vpop.eup %1724  ;;  %1304 = vmatpush.msrb.mxu0 %v1273_v25 }
 0x557   : > { %v1128_v33 = vmul.f32 %v1725_v32, %v1721_v26  ;;  %v1057_v35 = vpop.permute.xlu2 %1056  ;;  %v1727_v53 = vpop.eup %1726  ;;  %v1706_v26 = vld [vmem:[%s2234_s23] ss:$0 sm:$0xff] }
 0x558   : > { %1077 = vmatpush.msrb.mxu3 %v1057_v35  ;;  %v1200_v54 = vmul.f32 32.0, %v1727_v53  ;;  %vm1204_vm11 = vweird.f32 %v1727_v53 }
 0x559   : > { %1622 = vmatmul.msk.f32.vlgmr.msrb.gmra.mxu3 %vm874_vm7, %v1055_v36  ;;  %1625 = vmatmul.msk.f32.vlgmr.msrb.gmra.mxu2 %vm874_vm7, %v1128_v33 }
 0x55a   : > { %v1201_v55 = vsub.f32 1.0, %v1200_v54  ;;  %1256 = vmatpush.msra.mxu3 %v1236_v63 }
 0x55c   : > { %v1202_v56 = vmul.f32 %v1727_v53, %v1201_v55  ;;  %1257 = vmatpush.msra.mxu3 %v1235_v0 }
 0x55e   : > { %v1011_v37 = vpop.permute.xlu0 %1010  ;;  %v1203_v57 = vadd.f32 %v1727_v53, %v1202_v56  ;;  %1258 = vmatpush.msra.mxu3 %v1234_v1 }
 0x55f   : > { %1014 = vst.msk [vmem:[#allocation3] sm:$0xff] %vm1013_vm8, %v1011_v37 }
 0x560   : > { %v2069_v58 = vsel %vm1204_vm11, %v1727_v53, %v1203_v57  ;;  %1259 = vmatpush.msra.mxu3 %v1233_v2 }
 0x5dc   : > { %v1079_v38 = vpop.f32.mrf.mxu3  ;;  %v1152_v39 = vpop.f32.mrf.mxu2 }
 0x5dd   : > { %1156 = vrot.lane.b32.xlu0 %v1152_v39, %s1787_s19  ;;  %1083 = vrot.lane.b32.xlu2 %v1079_v38, %s1788_s0  ;;  %v1707_v39 = vld [vmem:[%s779_s25] ss:$0 sm:$0xff] }
 0x637   : > { %v1084_v44 = vpop.permute.xlu2 %1083 }
 0x638   : > { %1087 = vst.msk [vmem:[#allocation3] sm:$0xff] %vm1086_vm9, %v1084_v44 }
 0x64f   : > { %v1157_v45 = vpop.permute.xlu0 %1156 }
 0x650   : > { %1160 = vst.msk [vmem:[#allocation3] sm:$0xff] %vm1159_vm10, %v1157_v45 }
 0x657   : > { %v1161_v46 = vld [vmem:[#allocation3] sm:$0xff] }
 0x658   : > { %1626 = vmatmul.msk.f32.vlgmr.msra.gmra.mxu1 %vm847_vm6, %v1161_v46 }
 0x6d5   : > { %v1190_v48 = vpop.f32.mrf.mxu1 }
 0x6d6   : > { %v1191_v49 = vadd.f32 %v1703_v47, %v1190_v48 }
 0x6d8   : > { %v1193_v50 = vadd.f32 %v1191_v49, %v2008_v34 }
 0x6da   : > { %v1196_v51 = vsel %vm847_vm6, %v1193_v50, 0.0 }
 0x6db   : > { %1197 = vadd.xlane.f32.xlu1 %v1196_v51 }
 0x74e   : > { %v1198_v59 = vpop.xlane.xlu1 %1197 }
 0x74f   : > { %v1206_v34 = vmul.f32 %v2069_v58, %v1198_v59  ;;  %v1708_v59 = vld [vmem:[%s782_s3] ss:$0 sm:$0xff] }
 0x751   : > { %v1207_v60 = vsub.f32 %v1193_v50, %v1206_v34 }
 0x753   : > { %v1208_v61 = vmul.f32 %v1207_v60, %v1207_v60 }
 0x755   : > { %v1209_v62 = vsel %vm847_vm6, %v1208_v61, 0.0 }
 0x756   : > { %1210 = vadd.xlane.f32.xlu2 %v1209_v62 }
 0x7c9   : > { %v1211_v3 = vpop.xlane.xlu2 %1210 }
 0x7ca   : > { %v1212_v4 = vmul.f32 %v1211_v3, %v2069_v58 }
 0x7cc   : > { %v1213_v5 = vadd.f32 1e-05, %v1212_v4 }
 0x7ce   : > { %1728 = vrsqrt.f32 %v1213_v5  ;;  %vm1220_vm13 = vweird.f32 %v1213_v5 }
 0x7d4   : > { %v1729_v6 = vpop.eup %1728 }
 0x7d5   : > { %v1215_v7 = vmul.f32 %v1729_v6, %v1213_v5  ;;  %vm1221_vm12 = vweird.f32 %v1729_v6 }
 0x7d6   : > { %vm1222_vm14 = vmor %vm1220_vm13, %vm1221_vm12 }
 0x7d7   : > { %v1216_v8 = vmul.f32 %v1729_v6, %v1215_v7 }
 0x7d9   : > { %v1217_v9 = vmul.f32 0.5, %v1216_v8 }
 0x7db   : > { %v1218_v10 = vsub.f32 1.5, %v1217_v9 }
 0x7dd   : > { %v1219_v11 = vmul.f32 %v1729_v6, %v1218_v10 }
 0x7df   : > { %v1223_v13 = vsel %vm1222_vm14, %v1729_v6, %v1219_v11 }
 0x7e0   : > { %v1224_v14 = vmul.f32 %v1223_v13, %v1207_v60 }
 0x7e2   : > { %v1228_v16 = vmul.f32 %v1704_v12, %v1224_v14 }
 0x7e4   : > { %v1232_v17 = vadd.f32 %v1705_v15, %v1228_v16 }
 0x7e6   : > { %1627 = vmatmul.msk.f32.vlgmr.msra.gmra.mxu3 %vm847_vm6, %v1232_v17 }
 0x869   : > { %v1261_v27 = vpop.f32.mrf.mxu3 }
 0x86a   : > { %v1262_v28 = vadd.f32 %v1706_v26, %v1261_v27 }
 0x86c   : > { %v1265_v29 = vmul.f32 0.044715, %v1262_v28  ;;  %v1264_v36 = vmul.f32 0.5, %v1262_v28 }
 0x86e   : > { %v1266_v30 = vmul.f32 %v1265_v29, %v1262_v28 }
 0x870   : > { %v1267_v31 = vmul.f32 %v1266_v30, %v1262_v28 }
 0x872   : > { %v1268_v32 = vadd.f32 %v1267_v31, %v1262_v28 }
 0x874   : > { %v1269_v33 = vmul.f32 0.7978846, %v1268_v32 }
 0x876   : > { %1730 = vtanh.f32 %v1269_v33 }
 0x87c   : > { %v1731_v35 = vpop.eup %1730 }
 0x87d   : > { %v1271_v37 = vadd.f32 1.0, %v1731_v35 }
 0x87f   : > { %v1272_v38 = vmul.f32 %v1271_v37, %v1264_v36 }
 0x881   : > { %1628 = vmatmul.msk.f32.vlgmr.msrb.gmra.mxu0 %vm1285_vm15, %v1272_v38 }
 0x8fe   : > { %v1306_v40 = vpop.f32.mrf.mxu0 }
 0x8ff   : > { %v1307_v41 = vadd.f32 %v1707_v39, %v1306_v40 }
 0x901   : > { %v1309_v42 = vadd.f32 %v1307_v41, %v1232_v17 }
 0x903   : > { %v1312_v43 = vsel %vm847_vm6, %v1309_v42, 0.0 }
 0x904   : > { %1313 = vadd.xlane.f32.xlu0 %v1312_v43 }
 0x977   : > { %v1314_v44 = vpop.xlane.xlu0 %1313 }
 0x978   : > { %v1315_v45 = vmul.f32 %v1314_v44, %v2069_v58 }
 0x97a   : > { %v1316_v46 = vsub.f32 %v1309_v42, %v1315_v45 }
 0x97c   : > { %v1317_v47 = vmul.f32 %v1316_v46, %v1316_v46 }
 0x97e   : > { %v1318_v48 = vsel %vm847_vm6, %v1317_v47, 0.0 }
 0x97f   : > { %1319 = vadd.xlane.f32.xlu1 %v1318_v48 }
 0x9f2   : > { %v1320_v49 = vpop.xlane.xlu1 %1319 }
 0x9f3   : > { %v1321_v50 = vmul.f32 %v1320_v49, %v2069_v58  ;;  %v1709_v58 = vld [vmem:[%s785_s10] ss:$0 sm:$0xff] }
 0x9f5   : > { %v1322_v51 = vadd.f32 1e-05, %v1321_v50 }
 0x9f7   : > { %1732 = vrsqrt.f32 %v1322_v51  ;;  %vm1329_vm1 = vweird.f32 %v1322_v51 }
 0x9fd   : > { %v1733_v52 = vpop.eup %1732 }
 0x9fe   : > { %v1324_v53 = vmul.f32 %v1733_v52, %v1322_v51  ;;  %vm1330_vm0 = vweird.f32 %v1733_v52 }
 0x9ff   : > { %vm1331_vm2 = vmor %vm1329_vm1, %vm1330_vm0 }
 0xa00   : > { %v1325_v54 = vmul.f32 %v1733_v52, %v1324_v53 }
 0xa02   : > { %v1326_v55 = vmul.f32 0.5, %v1325_v54 }
 0xa04   : > { %v1327_v56 = vsub.f32 1.5, %v1326_v55 }
 0xa06   : > { %v1328_v57 = vmul.f32 %v1733_v52, %v1327_v56 }
 0xa08   : > { %v1332_v34 = vsel %vm1331_vm2, %v1733_v52, %v1328_v57 }
 0xa09   : > { %v1333_v60 = vmul.f32 %v1332_v34, %v1316_v46 }
 0xa0b   : > { %v1337_v61 = vmul.f32 %v1708_v59, %v1333_v60  ;;  %1345 = sbr.rel (%p1612_p7) target bundleno = 2578 (0xa12), region = 100 }
 0xa0d   : > { %v1341_v62 = vadd.f32 %v1709_v58, %v1337_v61 }
 0xa0f   : > { %1342 = vst.msk [vmem:[#allocation2] sm:$0xff] %vm847_vm6, %v1341_v62 }
 0xa10   : > { %vm1346_vm3 = vcmask 253952  }
 0xa11   : > { %1347 = vst.msk [vmem:[#allocation4] sm:$0x1] %vm1346_vm3, %v1341_v62 }
 0xa12 PF: > { %s2237_s16 = sld [smem:[#allocation6_spill]] }
 0xa18   : > { %p1630_p8 = scmp.ne.s32.totalorder %s2237_s16, 1 }
 0xa19   : > { %s2238_s1 = sld [smem:[#allocation22_spill]] (!%p1630_p8) }
 0xa1a   : > { %1351 = sbr.rel (%p1630_p8) target bundleno = 2731 (0xaab), region = 104 }
 0xa1f   : > { %s2239_s15 = smov %s2238_s1  ;;  %v1359_v63 = vld [vmem:[%s2238_s1 + $0x38] sm:$0xff]  ;;  %v1360_v7 = vld [vmem:[#allocation4] sm:$0x1]  ;;  %v1407_v10 = vld [vmem:[#allocation5] sm:$0x1]  ;;  %vm1409_vm4 = vcmask 0  }
 0xa20   : > { %v1355_v0 = vld [vmem:[%s2239_s15 + $0x18] sm:$0xff]  ;;  %v1358_v1 = vld [vmem:[%s2239_s15 + $0x30] sm:$0xff]  ;;  %1376 = vmatpush.msra.mxu0 %v1359_v63  ;;  %v1357_v3 = vld [vmem:[%s2239_s15 + $0x28] sm:$0xff] }
 0xa21   : > { %1399 = vmatpush.msra.mxu1 %v1355_v0  ;;  %v1354_v2 = vld [vmem:[%s2239_s15 + $0x10] sm:$0xff]  ;;  %v1353_v4 = vld [vmem:[%s2239_s15 + $0x8] sm:$0xff]  ;;  %v1356_v5 = vld [vmem:[%s2239_s15 + $0x20] sm:$0xff] }
 0xa22   : > { %1377 = vmatpush.msra.mxu0 %v1358_v1  ;;  %v1352_v6 = vld [vmem:[%s2239_s15] sm:$0xff] }
 0xa23   : > { %1400 = vmatpush.msra.mxu1 %v1354_v2 }
 0xa24   : > { %1378 = vmatpush.msra.mxu0 %v1357_v3 }
 0xa25   : > { %1401 = vmatpush.msra.mxu1 %v1353_v4 }
 0xa26   : > { %1379 = vmatpush.msra.mxu0 %v1356_v5 }
 0xa27   : > { %1402 = vmatpush.msra.mxu1 %v1352_v6  ;;  %1631 = vmatmul.msk.f32.vlgmr.msra.gmra.mxu0 %vm847_vm6, %v1360_v7 }
 0xa28   : > { %1632 = vmatmul.msk.f32.vlgmr.msra.gmra.mxu1 %vm847_vm6, %v1341_v62 }
 0xaa4   : > { %v1381_v8 = vpop.f32.mrf.mxu0 }
 0xaa5   : > { %v1404_v9 = vpop.f32.mrf.mxu1 }
 0xaa6   : > { %v1405_v11 = vadd.f32 %v1404_v9, %v1381_v8 }
 0xaa8   : > { %v1408_v12 = vadd.f32 %v1407_v10, %v1405_v11 }
 0xaaa   : > { %1410 = vst.msk [vmem:[%s788_s11] sm:$0x1] %vm1409_vm4, %v1408_v12 }
 0xaab PF: > { %s2241_s20 = sld [smem:[#allocation9_spill]] }
 0xaac   : > { %s2242_s29 = sld [smem:[#allocation7_spill]] }
 0xaad   : > { %s2243_s30 = sld [smem:[#allocation8_spill]] }
 0xaae   : > { %s2244_s0 = sld [smem:[#allocation10_spill]] }
 0xaaf   : > { %s2245_s19 = sld [smem:[#allocation11_spill]] }
 0xab1   : > { %s30_s1 = sadd.s32 1, %s2241_s20  }
 0xab2   : > { %p27_p9 = scmp.ge.s32.totalorder %s30_s1, 6  }
 0xab4   :  { %29 = sbr.rel (!%p27_p9) target bundleno = 13 (0xd), region = 173 }

</bundles_post_ra>
